<compile_context>
chip_gen: v5e
topology: v5e:2x2
jax: 0.10.0
libtpu: 0.0.40
codegen_flags: <defaults>
</compile_context>

<pallas_src>
import functools
import math

import jax
import jax.numpy as jnp
from jax import lax
from jax.experimental import pallas as pl
from jax.experimental.pallas import tpu as pltpu


def _round_up(x, m):
    return (x + m - 1) // m * m


# ---------------------------------------------------------------------------
# In-kernel helpers
# ---------------------------------------------------------------------------
def _layer_norm(x, gamma, beta, eps=1e-5):
    # Two INDEPENDENT reductions (E[x], E[x^2]) rather than a dependent
    # (x - mu)^2 second pass -> less serialized XLU work per LN.
    mu = jnp.mean(x, axis=-1, keepdims=True)
    ms = jnp.mean(x * x, axis=-1, keepdims=True)
    var = jnp.maximum(ms - mu * mu, 0.0)
    return (x - mu) * lax.rsqrt(var + eps) * gamma + beta


# ---------------------------------------------------------------------------
# Small tiled Linear kernel (embedding / unembedding)
# ---------------------------------------------------------------------------
def _linear_kernel(x_ref, w_ref, b_ref, o_ref):
    y = jnp.dot(x_ref[...].astype(jnp.bfloat16), w_ref[...],
                preferred_element_type=jnp.float32) + b_ref[...]
    o_ref[...] = y.astype(o_ref.dtype)


def _linear(x2, w, b, out_dtype, row_block, vmem_limit):
    rows, d_in = x2.shape
    d_out = w.shape[1]
    return pl.pallas_call(
        _linear_kernel,
        out_shape=jax.ShapeDtypeStruct((rows, d_out), out_dtype),
        grid=(rows // row_block,),
        in_specs=[
            pl.BlockSpec((row_block, d_in), lambda i: (i, 0)),
            pl.BlockSpec((d_in, d_out), lambda i: (0, 0)),
            pl.BlockSpec((1, d_out), lambda i: (0, 0)),
        ],
        out_specs=pl.BlockSpec((row_block, d_out), lambda i: (i, 0)),
        compiler_params=pltpu.CompilerParams(
            dimension_semantics=("parallel",),
            vmem_limit_bytes=vmem_limit),
    )(x2, w, b)


# ---------------------------------------------------------------------------
# Fused transformer stack: grid = (batch_tiles, layers)
# Residual stream lives in VMEM scratch across the layer axis.
# ---------------------------------------------------------------------------
def _transformer_stack_kernel(
    x_ref, mask_ref,
    ln1g_ref, ln1b_ref, wqkv_ref, wo_ref,
    ln2g_ref, ln2b_ref, w1_ref, b1_ref, w2_ref, b2_ref,
    o_ref,
    h_scr,
    *,
    seq_len,
    attention_size,
    attention_size_padded,
):
    l = pl.program_id(1)
    last = pl.num_programs(1) - 1

    N, _D = h_scr.shape            # N = Bt * S flat rows, _D = model dim
    S = seq_len
    Bt = N // S
    A = attention_size             # logical head dim (for the 1/sqrt(A) scale)
    Ap = attention_size_padded     # lane-aligned (multiple of 128), zero-padded

    # ---- layer 0 prologue: load the (bf16) embedded input into f32 scratch --
    @pl.when(l == 0)
    def _():
        h_scr[...] = x_ref[...].astype(jnp.float32)

    x = h_scr[...]                                              # (N, D) f32

    # ---- attention sub-block ------------------------------------------------
    h = _layer_norm(x, ln1g_ref[0], ln1b_ref[0])
    qkv = jnp.dot(h.astype(jnp.bfloat16), wqkv_ref[0],
                  preferred_element_type=jnp.float32)           # (N, 3*Ap)
    # Ap is a multiple of 128 -> lane-aligned slices (no relayout).
    q = qkv[:, :Ap].reshape(Bt, S, Ap).astype(jnp.bfloat16)
    k = qkv[:, Ap:2 * Ap].reshape(Bt, S, Ap).astype(jnp.bfloat16)
    v = qkv[:, 2 * Ap:].reshape(Bt, S, Ap).astype(jnp.bfloat16)

    scale = 1.0 / math.sqrt(A)
    scores = jnp.einsum('bqa,bka->bqk', q, k,
                        preferred_element_type=jnp.float32) * scale  # (Bt,S,S)
    scores = scores + mask_ref[...][None, :, :]                 # additive mask

    scores = scores - jnp.max(scores, axis=-1, keepdims=True)
    p = jnp.exp(scores)
    p = p * pl.reciprocal(jnp.sum(p, axis=-1, keepdims=True), approx=True)

    attn = jnp.einsum('bqk,bka->bqa', p.astype(jnp.bfloat16), v,
                      preferred_element_type=jnp.float32)       # (Bt, S, Ap)
    attn_out = jnp.dot(attn.reshape(N, Ap).astype(jnp.bfloat16), wo_ref[0],
                       preferred_element_type=jnp.float32)      # (N, D)
    x = x + attn_out

    # ---- MLP sub-block --------------------------------------------------------
    h2 = _layer_norm(x, ln2g_ref[0], ln2b_ref[0])
    ff = jnp.dot(h2.astype(jnp.bfloat16), w1_ref[0],
                 preferred_element_type=jnp.float32) + b1_ref[0]
    # TODO(synk): tanh-approx GELU; PyTorch nn.GELU default is the exact erf form.
    ff = jax.nn.gelu(ff, approximate=True)
    ff = jnp.dot(ff.astype(jnp.bfloat16), w2_ref[0],
                 preferred_element_type=jnp.float32) + b2_ref[0]
    x = x + ff

    h_scr[...] = x

    # ---- last layer epilogue: single bf16 output store per batch tile --------
    @pl.when(l == last)
    def _():
        o_ref[...] = x.astype(o_ref.dtype)


# ---------------------------------------------------------------------------
# VMEM budget (explicit; default scoped VMEM is only 16 MiB on v5e / 32 MiB
# on v6e & v7x).  Conservatively clamped to <= 64 MiB so the request is valid
# on every generation (v7x physical VMEM per TC is 64 MiB).
# ---------------------------------------------------------------------------
def _vmem_budget(*, N, Bt, S, D, Ap, Hp):
    bf16, f32 = 2, 4
    # one layer's streamed weight slab (bf16 matmuls + f32 LN/bias vectors)
    layer_slab = ((D * 3 * Ap + Ap * D + D * Hp + Hp * D) * bf16
                  + (5 * D + Hp) * f32)
    resident = (N * D * f32            # residual scratch
                + 2 * N * D * bf16     # (double-buffered) bf16 input block
                + 2 * N * D * bf16     # bf16 output block
                + S * S * f32)         # additive mask
    # activation temporaries (qkv, scores, probs, attn, MLP hidden, LN temps)
    act = (N * 3 * Ap + 2 * Bt * S * S + N * Ap + N * Hp + 4 * N * D) * f32
    budget = int((2 * layer_slab + resident + act) * 1.25)       # ~25% headroom
    return min(max(budget, 16 * 1024 * 1024), 64 * 1024 * 1024)


# ---------------------------------------------------------------------------
# Wrapper
# ---------------------------------------------------------------------------
def model_forward(x, params, *, attention_size, decoder, batch_block=None):
    """x: (B, S, D) float32 -> (B, S, D) float32."""
    B, S, D = x.shape
    L = params["ln1_g"].shape[0]
    Hp = params["w1"].shape[2]            # padded MLP hidden
    Ap = params["wqkv"].shape[2] // 3     # padded attention dim
    A = attention_size

    if batch_block is None:
        # >= 2 batch tiles when possible so the "parallel" grid axis 0 can be
        # sharded across v7x's two TensorCores.  For real workloads, size
        # N = Bt*S from the HBM-vs-MXU roofline (rows must amortize the
        # per-layer weight-slab DMA).
        batch_block = B // 2 if (B >= 2 and B % 2 == 0) else B
    assert B % batch_block == 0, "batch_block must divide batch"
    Bt = batch_block
    N = Bt * S                            # rows per grid step

    vmem_limit = _vmem_budget(N=N, Bt=Bt, S=S, D=D, Ap=Ap, Hp=Hp)

    x2 = x.reshape(B * S, D)

    # --- Embedding as its own GEMM kernel: keeps the DxD embed matrix out of
    # --- the layer loop's resident VMEM; bf16 output halves the resident
    # --- input block and HBM traffic of the fused stack kernel.
    emb = _linear(x2, params["emb_in_w"], params["emb_in_b"],
                  jnp.bfloat16, N, vmem_limit)

    # --- Additive attention mask built once (not rebuilt every layer).
    if decoder:
        row = lax.broadcasted_iota(jnp.int32, (S, S), 0)
        col = lax.broadcasted_iota(jnp.int32, (S, S), 1)
        mask = jnp.where(col <= row, 0.0, -1e30).astype(jnp.float32)
    else:
        mask = jnp.zeros((S, S), jnp.float32)

    def per_layer(shape):                 # one layer slab per step on grid axis 1
        return pl.BlockSpec((1,) + shape,
                            lambda b, l: (l,) + (0,) * len(shape))

    kernel = functools.partial(
        _transformer_stack_kernel,
        seq_len=S, attention_size=A, attention_size_padded=Ap)

    hid = pl.pallas_call(
        kernel,
        out_shape=jax.ShapeDtypeStruct((B * S, D), jnp.bfloat16),
        grid=(B // Bt, L),
        in_specs=[
            pl.BlockSpec((N, D), lambda b, l: (b, 0)),            # embedded input
            pl.BlockSpec((S, S), lambda b, l: (0, 0)),            # additive mask
            per_layer((1, D)), per_layer((1, D)),                 # ln1 gamma/beta
            per_layer((D, 3 * Ap)), per_layer((Ap, D)),           # wqkv, wo
            per_layer((1, D)), per_layer((1, D)),                 # ln2 gamma/beta
            per_layer((D, Hp)), per_layer((1, Hp)),               # w1, b1
            per_layer((Hp, D)), per_layer((1, D)),                 # w2, b2
        ],
        out_specs=pl.BlockSpec((N, D), lambda b, l: (b, 0)),
        scratch_shapes=[pltpu.VMEM((N, D), jnp.float32)],          # resident acts
        compiler_params=pltpu.CompilerParams(
            # layer axis MUST be last + "arbitrary" (resident-scratch carry);
            # batch-tile axis "parallel" for megacore sharding.
            dimension_semantics=("parallel", "arbitrary"),
            vmem_limit_bytes=vmem_limit),
    )(
        emb, mask,
        params["ln1_g"], params["ln1_b"],
        params["wqkv"], params["wo"],
        params["ln2_g"], params["ln2_b"],
        params["w1"], params["b1"],
        params["w2"], params["b2"],
    )

    # --- UnEmbedding as its own GEMM kernel.
    out2 = _linear(hid, params["emb_out_w"], params["emb_out_b"],
                   jnp.float32, N, vmem_limit)
    return out2.reshape(B, S, D)


# ---------------------------------------------------------------------------
# Parameter construction (deterministic, layer-stacked, bf16 matmul weights,
# attention/MLP dims zero-padded to 128-lane multiples — mathematically exact).
# ---------------------------------------------------------------------------
def init_params(key, *, size, size_internal, attention_size, layers):
    D, H, A, L = size, size_internal, attention_size, layers
    Ap = _round_up(A, 128)   # lane-aligned Q/K/V slabs (free lane slicing)
    Hp = _round_up(H, 128)   # lane-aligned MLP hidden (gelu(0)=0 -> exact)
    # NOTE: for best v6e/v7x MXU efficiency choose D, H, A as multiples of 256.

    def normal(k, shape):
        w = 0.02 * jax.random.normal(k, shape, dtype=jnp.float32)
        return w.astype(jnp.bfloat16)         # MXU operands stored bf16

    def pad_last(w, target):
        pad = target - w.shape[-1]
        return w if pad == 0 else jnp.pad(w, [(0, 0)] * (w.ndim - 1) + [(0, pad)])

    keys = jax.random.split(key, 8)
    wq = normal(keys[2], (L, D, A))
    wk = normal(keys[3], (L, D, A))
    wv = normal(keys[4], (L, D, A))
    wqkv = jnp.concatenate(
        [pad_last(wq, Ap), pad_last(wk, Ap), pad_last(wv, Ap)], axis=-1)
    wo = jnp.pad(normal(keys[5], (L, A, D)), ((0, 0), (0, Ap - A), (0, 0)))
    w1 = pad_last(normal(keys[6], (L, D, H)), Hp)
    w2 = jnp.pad(normal(keys[7], (L, H, D)), ((0, 0), (0, Hp - H), (0, 0)))

    return {
        "emb_in_w": normal(keys[0], (D, D)),
        "emb_in_b": jnp.zeros((1, D), jnp.float32),
        "emb_out_w": normal(keys[1], (D, D)),
        "emb_out_b": jnp.zeros((1, D), jnp.float32),
        "ln1_g": jnp.ones((L, 1, D), jnp.float32),
        "ln1_b": jnp.zeros((L, 1, D), jnp.float32),
        "wqkv": wqkv,                         # (L, D, 3*Ap) fused Wq|Wk|Wv
        "wo": wo,                             # (L, Ap, D)
        "ln2_g": jnp.ones((L, 1, D), jnp.float32),
        "ln2_b": jnp.zeros((L, 1, D), jnp.float32),
        "w1": w1,                             # (L, D, Hp)
        "b1": jnp.zeros((L, 1, Hp), jnp.float32),
        "w2": w2,                             # (L, Hp, D)
        "b2": jnp.zeros((L, 1, D), jnp.float32),
    }


# ---------------------------------------------------------------------------
if __name__ == "__main__":
    B, S = 2, 8
    transformer_params = dict(size=32, size_internal=64, attention_size=32,
                              decoder=True)
    layers = 8

    key = jax.random.PRNGKey(0)
    pkey, xkey = jax.random.split(key)
    params = init_params(
        pkey,
        size=transformer_params["size"],
        size_internal=transformer_params["size_internal"],
        attention_size=transformer_params["attention_size"],
        layers=layers,
    )
    x = jax.random.normal(xkey, (B, S, transformer_params["size"]),
                          dtype=jnp.float32)

    fwd = jax.jit(functools.partial(
        model_forward,
        attention_size=transformer_params["attention_size"],
        decoder=transformer_params["decoder"],
    ))
    out = fwd(x, params)
    jax.block_until_ready(out)
    assert out.shape == (B, S, transformer_params["size"])
    assert bool(jnp.all(jnp.isfinite(out)))
    print("KERNEL_OK")
</pallas_src>

<mosaic_0001>
module attributes {stable_mosaic.version = 11 : i64} {
  func.func @_linear_kernel(%arg0: i32, %arg1: memref<8x32xf32, #tpu.memory_space<vmem>>, %arg2: memref<32x32xbf16, #tpu.memory_space<vmem>>, %arg3: memref<1x32xf32, #tpu.memory_space<vmem>>, %arg4: memref<8x32xbf16, #tpu.memory_space<vmem>>) attributes {dimension_semantics = [#tpu.dimension_semantics<parallel>], iteration_bounds = array<i64: 2>, scalar_prefetch = 0 : i64, scratch_operands = 0 : i64, tpu.core_type = #tpu.core_type<tc>, window_params = [{transform_indices = @transform_0, window_bounds = array<i64: 8, 32>}, {pipeline_mode = #tpu.pipeline_mode<synchronous>, transform_indices = @transform_1, window_bounds = array<i64: 32, 32>}, {pipeline_mode = #tpu.pipeline_mode<synchronous>, transform_indices = @transform_2, window_bounds = array<i64: 1, 32>}, {transform_indices = @transform_3, window_bounds = array<i64: 8, 32>}]} {
    %c0 = arith.constant 0 : index
    %c0_0 = arith.constant 0 : index
    %0 = vector.load %arg1[%c0, %c0_0] : memref<8x32xf32, #tpu.memory_space<vmem>>, vector<8x32xf32>
    %1 = arith.truncf %0 : vector<8x32xf32> to vector<8x32xbf16>
    %c0_1 = arith.constant 0 : index
    %c0_2 = arith.constant 0 : index
    %2 = vector.load %arg2[%c0_1, %c0_2] : memref<32x32xbf16, #tpu.memory_space<vmem>>, vector<32x32xbf16>
    %cst = arith.constant dense<0.000000e+00> : vector<8x32xf32>
    %3 = tpu.matmul %1, %2, %cst {dimension_numbers = #tpu.dot_dimension_numbers<[1], [0], [0], [1], [0, 0, 1, 1], [], []>} : vector<8x32xbf16>, vector<32x32xbf16>, vector<8x32xf32> -> vector<8x32xf32>
    %c0_3 = arith.constant 0 : index
    %c0_4 = arith.constant 0 : index
    %4 = vector.load %arg3[%c0_3, %c0_4] : memref<1x32xf32, #tpu.memory_space<vmem>>, vector<1x32xf32>
    %5 = vector.broadcast %4 : vector<1x32xf32> to vector<8x32xf32>
    %6 = arith.addf %3, %5 : vector<8x32xf32>
    %7 = arith.truncf %6 : vector<8x32xf32> to vector<8x32xbf16>
    %c0_5 = arith.constant 0 : index
    %c0_6 = arith.constant 0 : index
    %8 = vector.load %arg4[%c0_5, %c0_6] : memref<8x32xbf16, #tpu.memory_space<vmem>>, vector<8x32xbf16>
    tpu.vector_store %arg4[%c0_5, %c0_6], %7 {strides = array<i32>} : memref<8x32xbf16, #tpu.memory_space<vmem>>, vector<8x32xbf16>,
    return
  }
  func.func @transform_0(%arg0: i32) -> (i32, i32) {
    %c0_i32 = arith.constant 0 : i32
    %c0_i32_0 = arith.constant 0 : i32
    return %arg0, %c0_i32 : i32, i32
  }
  func.func @transform_1(%arg0: i32) -> (i32, i32) {
    %c0_i32 = arith.constant 0 : i32
    %c0_i32_0 = arith.constant 0 : i32
    %c0_i32_1 = arith.constant 0 : i32
    return %c0_i32, %c0_i32_0 : i32, i32
  }
  func.func @transform_2(%arg0: i32) -> (i32, i32) {
    %c0_i32 = arith.constant 0 : i32
    %c0_i32_0 = arith.constant 0 : i32
    %c0_i32_1 = arith.constant 0 : i32
    return %c0_i32, %c0_i32_0 : i32, i32
  }
  func.func @transform_3(%arg0: i32) -> (i32, i32) {
    %c0_i32 = arith.constant 0 : i32
    %c0_i32_0 = arith.constant 0 : i32
    return %arg0, %c0_i32 : i32, i32
  }
}

module attributes {stable_mosaic.version = 11 : i64} {
  func.func @_transformer_stack_kernel(%arg0: i32, %arg1: i32, %arg2: memref<8x32xbf16, #tpu.memory_space<vmem>>, %arg3: memref<8x8xf32, #tpu.memory_space<vmem>>, %arg4: memref<1x1x32xf32, #tpu.memory_space<vmem>>, %arg5: memref<1x1x32xf32, #tpu.memory_space<vmem>>, %arg6: memref<1x32x384xbf16, #tpu.memory_space<vmem>>, %arg7: memref<1x128x32xbf16, #tpu.memory_space<vmem>>, %arg8: memref<1x1x32xf32, #tpu.memory_space<vmem>>, %arg9: memref<1x1x32xf32, #tpu.memory_space<vmem>>, %arg10: memref<1x32x128xbf16, #tpu.memory_space<vmem>>, %arg11: memref<1x1x128xf32, #tpu.memory_space<vmem>>, %arg12: memref<1x128x32xbf16, #tpu.memory_space<vmem>>, %arg13: memref<1x1x32xf32, #tpu.memory_space<vmem>>, %arg14: memref<8x32xbf16, #tpu.memory_space<vmem>>, %arg15: memref<8x32xf32, #tpu.memory_space<vmem>>) attributes {dimension_semantics = [#tpu.dimension_semantics<parallel>, #tpu.dimension_semantics<arbitrary>], iteration_bounds = array<i64: 2, 8>, scalar_prefetch = 0 : i64, scratch_operands = 1 : i64, tpu.core_type = #tpu.core_type<tc>, window_params = [{transform_indices = @transform_0, window_bounds = array<i64: 8, 32>}, {pipeline_mode = #tpu.pipeline_mode<synchronous>, transform_indices = @transform_1, window_bounds = array<i64: 8, 8>}, {transform_indices = @transform_2, window_bounds = array<i64: 1, 1, 32>}, {transform_indices = @transform_3, window_bounds = array<i64: 1, 1, 32>}, {transform_indices = @transform_4, window_bounds = array<i64: 1, 32, 384>}, {transform_indices = @transform_5, window_bounds = array<i64: 1, 128, 32>}, {transform_indices = @transform_6, window_bounds = array<i64: 1, 1, 32>}, {transform_indices = @transform_7, window_bounds = array<i64: 1, 1, 32>}, {transform_indices = @transform_8, window_bounds = array<i64: 1, 32, 128>}, {transform_indices = @transform_9, window_bounds = array<i64: 1, 1, 128>}, {transform_indices = @transform_10, window_bounds = array<i64: 1, 128, 32>}, {transform_indices = @transform_11, window_bounds = array<i64: 1, 1, 32>}, {transform_indices = @transform_12, window_bounds = array<i64: 8, 32>}]} {
    %c0_i32 = arith.constant 0 : i32
    %0 = arith.cmpi eq, %arg1, %c0_i32 : i32
    %1 = arith.extui %0 : i1 to i32
    %c0_i32_0 = arith.constant 0 : i32
    %2 = arith.cmpi ne, %1, %c0_i32_0 : i32
    scf.if %2 {
      %c0_61 = arith.constant 0 : index
      %c0_62 = arith.constant 0 : index
      %131 = vector.load %arg2[%c0_61, %c0_62] : memref<8x32xbf16, #tpu.memory_space<vmem>>, vector<8x32xbf16>
      %132 = arith.extf %131 : vector<8x32xbf16> to vector<8x32xf32>
      %c0_63 = arith.constant 0 : index
      %c0_64 = arith.constant 0 : index
      %133 = vector.load %arg15[%c0_63, %c0_64] : memref<8x32xf32, #tpu.memory_space<vmem>>, vector<8x32xf32>
      tpu.vector_store %arg15[%c0_63, %c0_64], %132 {strides = array<i32>} : memref<8x32xf32, #tpu.memory_space<vmem>>, vector<8x32xf32>,
    } else {
    }
    %c0 = arith.constant 0 : index
    %c0_1 = arith.constant 0 : index
    %3 = vector.load %arg15[%c0, %c0_1] : memref<8x32xf32, #tpu.memory_space<vmem>>, vector<8x32xf32>
    %c0_2 = arith.constant 0 : index
    %c0_3 = arith.constant 0 : index
    %c0_4 = arith.constant 0 : index
    %4 = vector.load %arg4[%c0_2, %c0_3, %c0_4] : memref<1x1x32xf32, #tpu.memory_space<vmem>>, vector<1x1x32xf32>
    %5 = vector.shape_cast %4 : vector<1x1x32xf32> to vector<1x32xf32>
    %c0_5 = arith.constant 0 : index
    %c0_6 = arith.constant 0 : index
    %c0_7 = arith.constant 0 : index
    %6 = vector.load %arg5[%c0_5, %c0_6, %c0_7] : memref<1x1x32xf32, #tpu.memory_space<vmem>>, vector<1x1x32xf32>
    %7 = vector.shape_cast %6 : vector<1x1x32xf32> to vector<1x32xf32>
    %cst = arith.constant dense<0.000000e+00> : vector<8xf32>
    %8 = vector.multi_reduction <add>, %3, %cst [1] : vector<8x32xf32> to vector<8xf32>
    %9 = vector.shape_cast %8 : vector<8xf32> to vector<8x1xf32>
    %cst_8 = arith.constant 3.200000e+01 : f32
    %10 = vector.broadcast %cst_8 : f32 to vector<8x1xf32>
    %11 = arith.divf %9, %10 : vector<8x1xf32>
    %12 = arith.mulf %3, %3 : vector<8x32xf32>
    %cst_9 = arith.constant dense<0.000000e+00> : vector<8xf32>
    %13 = vector.multi_reduction <add>, %12, %cst_9 [1] : vector<8x32xf32> to vector<8xf32>
    %14 = vector.shape_cast %13 : vector<8xf32> to vector<8x1xf32>
    %cst_10 = arith.constant 3.200000e+01 : f32
    %15 = vector.broadcast %cst_10 : f32 to vector<8x1xf32>
    %16 = arith.divf %14, %15 : vector<8x1xf32>
    %17 = arith.mulf %11, %11 : vector<8x1xf32>
    %18 = arith.subf %16, %17 : vector<8x1xf32>
    %cst_11 = arith.constant 0.000000e+00 : f32
    %19 = vector.broadcast %cst_11 : f32 to vector<8x1xf32>
    %20 = arith.maximumf %18, %19 : vector<8x1xf32>
    %21 = vector.broadcast %11 : vector<8x1xf32> to vector<8x32xf32>
    %22 = arith.subf %3, %21 : vector<8x32xf32>
    %cst_12 = arith.constant 9.99999974E-6 : f32
    %23 = vector.broadcast %cst_12 : f32 to vector<8x1xf32>
    %24 = arith.addf %20, %23 : vector<8x1xf32>
    %25 = math.rsqrt %24 : vector<8x1xf32>
    %26 = vector.broadcast %25 : vector<8x1xf32> to vector<8x32xf32>
    %27 = arith.mulf %22, %26 : vector<8x32xf32>
    %28 = vector.broadcast %5 : vector<1x32xf32> to vector<8x32xf32>
    %29 = arith.mulf %27, %28 : vector<8x32xf32>
    %30 = vector.broadcast %7 : vector<1x32xf32> to vector<8x32xf32>
    %31 = arith.addf %29, %30 : vector<8x32xf32>
    %32 = arith.truncf %31 : vector<8x32xf32> to vector<8x32xbf16>
    %c0_13 = arith.constant 0 : index
    %c0_14 = arith.constant 0 : index
    %c0_15 = arith.constant 0 : index
    %33 = vector.load %arg6[%c0_13, %c0_14, %c0_15] : memref<1x32x384xbf16, #tpu.memory_space<vmem>>, vector<1x32x384xbf16>
    %34 = vector.shape_cast %33 : vector<1x32x384xbf16> to vector<32x384xbf16>
    %cst_16 = arith.constant dense<0.000000e+00> : vector<8x384xf32>
    %35 = tpu.matmul %32, %34, %cst_16 {dimension_numbers = #tpu.dot_dimension_numbers<[1], [0], [0], [1], [0, 0, 1, 1], [], []>} : vector<8x32xbf16>, vector<32x384xbf16>, vector<8x384xf32> -> vector<8x384xf32>
    %36 = vector.extract_strided_slice %35 {offsets = [0, 0], sizes = [8, 128], strides = [1, 1]} : vector<8x384xf32> to vector<8x128xf32>
    %37 = vector.shape_cast %36 : vector<8x128xf32> to vector<1x8x128xf32>
    %38 = arith.truncf %37 : vector<1x8x128xf32> to vector<1x8x128xbf16>
    %39 = vector.extract_strided_slice %35 {offsets = [0, 128], sizes = [8, 128], strides = [1, 1]} : vector<8x384xf32> to vector<8x128xf32>
    %40 = vector.shape_cast %39 : vector<8x128xf32> to vector<1x8x128xf32>
    %41 = arith.truncf %40 : vector<1x8x128xf32> to vector<1x8x128xbf16>
    %42 = vector.extract_strided_slice %35 {offsets = [0, 256], sizes = [8, 128], strides = [1, 1]} : vector<8x384xf32> to vector<8x128xf32>
    %43 = vector.shape_cast %42 : vector<8x128xf32> to vector<1x8x128xf32>
    %44 = arith.truncf %43 : vector<1x8x128xf32> to vector<1x8x128xbf16>
    "tpu.trace_start"() <{level = 10 : i32, message = "bqa,bka->bqk"}> : () -> ()
    %cst_17 = arith.constant dense<0.000000e+00> : vector<1x8x8xf32>
    %45 = tpu.matmul %38, %41, %cst_17 {dimension_numbers = #tpu.dot_dimension_numbers<[2], [2], [1], [1], [0, 0, 0, 1, 1, 1], [0], [0]>} : vector<1x8x128xbf16>, vector<1x8x128xbf16>, vector<1x8x8xf32> -> vector<1x8x8xf32>
    "tpu.trace_stop"() : () -> ()
    %cst_18 = arith.constant 0.176776692 : f32
    %46 = vector.broadcast %cst_18 : f32 to vector<1x8x8xf32>
    %47 = arith.mulf %45, %46 : vector<1x8x8xf32>
    %c0_19 = arith.constant 0 : index
    %c0_20 = arith.constant 0 : index
    %48 = vector.load %arg3[%c0_19, %c0_20] : memref<8x8xf32, #tpu.memory_space<vmem>>, vector<8x8xf32>
    %49 = vector.shape_cast %48 : vector<8x8xf32> to vector<1x8x8xf32>
    %50 = arith.addf %47, %49 : vector<1x8x8xf32>
    %cst_21 = arith.constant dense<0xFF800000> : vector<1x8xf32>
    %51 = vector.multi_reduction <maximumf>, %50, %cst_21 [2] : vector<1x8x8xf32> to vector<1x8xf32>
    %52 = vector.shape_cast %51 : vector<1x8xf32> to vector<1x8x1xf32>
    %53 = vector.broadcast %52 : vector<1x8x1xf32> to vector<1x8x8xf32>
    %54 = arith.subf %50, %53 : vector<1x8x8xf32>
    %55 = math.exp %54 : vector<1x8x8xf32>
    %cst_22 = arith.constant dense<0.000000e+00> : vector<1x8xf32>
    %56 = vector.multi_reduction <add>, %55, %cst_22 [2] : vector<1x8x8xf32> to vector<1x8xf32>
    %57 = vector.shape_cast %56 : vector<1x8xf32> to vector<1x8x1xf32>
    %58 = tpu.reciprocal %57 {approx = true} : vector<1x8x1xf32> -> vector<1x8x1xf32>
    %59 = vector.broadcast %58 : vector<1x8x1xf32> to vector<1x8x8xf32>
    %60 = arith.mulf %55, %59 : vector<1x8x8xf32>
    %61 = arith.truncf %60 : vector<1x8x8xf32> to vector<1x8x8xbf16>
    "tpu.trace_start"() <{level = 10 : i32, message = "bqk,bka->bqa"}> : () -> ()
    %cst_23 = arith.constant dense<0.000000e+00> : vector<1x8x128xf32>
    %62 = tpu.matmul %61, %44, %cst_23 {dimension_numbers = #tpu.dot_dimension_numbers<[2], [1], [1], [2], [0, 0, 0, 1, 1, 2], [0], [0]>} : vector<1x8x8xbf16>, vector<1x8x128xbf16>, vector<1x8x128xf32> -> vector<1x8x128xf32>
    "tpu.trace_stop"() : () -> ()
    %63 = vector.shape_cast %62 : vector<1x8x128xf32> to vector<8x128xf32>
    %64 = arith.truncf %63 : vector<8x128xf32> to vector<8x128xbf16>
    %c0_24 = arith.constant 0 : index
    %c0_25 = arith.constant 0 : index
    %c0_26 = arith.constant 0 : index
    %65 = vector.load %arg7[%c0_24, %c0_25, %c0_26] : memref<1x128x32xbf16, #tpu.memory_space<vmem>>, vector<1x128x32xbf16>
    %66 = vector.shape_cast %65 : vector<1x128x32xbf16> to vector<128x32xbf16>
    %cst_27 = arith.constant dense<0.000000e+00> : vector<8x32xf32>
    %67 = tpu.matmul %64, %66, %cst_27 {dimension_numbers = #tpu.dot_dimension_numbers<[1], [0], [0], [1], [0, 0, 1, 1], [], []>} : vector<8x128xbf16>, vector<128x32xbf16>, vector<8x32xf32> -> vector<8x32xf32>
    %68 = arith.addf %3, %67 : vector<8x32xf32>
    %c0_28 = arith.constant 0 : index
    %c0_29 = arith.constant 0 : index
    %c0_30 = arith.constant 0 : index
    %69 = vector.load %arg8[%c0_28, %c0_29, %c0_30] : memref<1x1x32xf32, #tpu.memory_space<vmem>>, vector<1x1x32xf32>
    %70 = vector.shape_cast %69 : vector<1x1x32xf32> to vector<1x32xf32>
    %c0_31 = arith.constant 0 : index
    %c0_32 = arith.constant 0 : index
    %c0_33 = arith.constant 0 : index
    %71 = vector.load %arg9[%c0_31, %c0_32, %c0_33] : memref<1x1x32xf32, #tpu.memory_space<vmem>>, vector<1x1x32xf32>
    %72 = vector.shape_cast %71 : vector<1x1x32xf32> to vector<1x32xf32>
    %cst_34 = arith.constant dense<0.000000e+00> : vector<8xf32>
    %73 = vector.multi_reduction <add>, %68, %cst_34 [1] : vector<8x32xf32> to vector<8xf32>
    %74 = vector.shape_cast %73 : vector<8xf32> to vector<8x1xf32>
    %cst_35 = arith.constant 3.200000e+01 : f32
    %75 = vector.broadcast %cst_35 : f32 to vector<8x1xf32>
    %76 = arith.divf %74, %75 : vector<8x1xf32>
    %77 = arith.mulf %68, %68 : vector<8x32xf32>
    %cst_36 = arith.constant dense<0.000000e+00> : vector<8xf32>
    %78 = vector.multi_reduction <add>, %77, %cst_36 [1] : vector<8x32xf32> to vector<8xf32>
    %79 = vector.shape_cast %78 : vector<8xf32> to vector<8x1xf32>
    %cst_37 = arith.constant 3.200000e+01 : f32
    %80 = vector.broadcast %cst_37 : f32 to vector<8x1xf32>
    %81 = arith.divf %79, %80 : vector<8x1xf32>
    %82 = arith.mulf %76, %76 : vector<8x1xf32>
    %83 = arith.subf %81, %82 : vector<8x1xf32>
    %cst_38 = arith.constant 0.000000e+00 : f32
    %84 = vector.broadcast %cst_38 : f32 to vector<8x1xf32>
    %85 = arith.maximumf %83, %84 : vector<8x1xf32>
    %86 = vector.broadcast %76 : vector<8x1xf32> to vector<8x32xf32>
    %87 = arith.subf %68, %86 : vector<8x32xf32>
    %cst_39 = arith.constant 9.99999974E-6 : f32
    %88 = vector.broadcast %cst_39 : f32 to vector<8x1xf32>
    %89 = arith.addf %85, %88 : vector<8x1xf32>
    %90 = math.rsqrt %89 : vector<8x1xf32>
    %91 = vector.broadcast %90 : vector<8x1xf32> to vector<8x32xf32>
    %92 = arith.mulf %87, %91 : vector<8x32xf32>
    %93 = vector.broadcast %70 : vector<1x32xf32> to vector<8x32xf32>
    %94 = arith.mulf %92, %93 : vector<8x32xf32>
    %95 = vector.broadcast %72 : vector<1x32xf32> to vector<8x32xf32>
    %96 = arith.addf %94, %95 : vector<8x32xf32>
    %97 = arith.truncf %96 : vector<8x32xf32> to vector<8x32xbf16>
    %c0_40 = arith.constant 0 : index
    %c0_41 = arith.constant 0 : index
    %c0_42 = arith.constant 0 : index
    %98 = vector.load %arg10[%c0_40, %c0_41, %c0_42] : memref<1x32x128xbf16, #tpu.memory_space<vmem>>, vector<1x32x128xbf16>
    %99 = vector.shape_cast %98 : vector<1x32x128xbf16> to vector<32x128xbf16>
    %cst_43 = arith.constant dense<0.000000e+00> : vector<8x128xf32>
    %100 = tpu.matmul %97, %99, %cst_43 {dimension_numbers = #tpu.dot_dimension_numbers<[1], [0], [0], [1], [0, 0, 1, 1], [], []>} : vector<8x32xbf16>, vector<32x128xbf16>, vector<8x128xf32> -> vector<8x128xf32>
    %c0_44 = arith.constant 0 : index
    %c0_45 = arith.constant 0 : index
    %c0_46 = arith.constant 0 : index
    %101 = vector.load %arg11[%c0_44, %c0_45, %c0_46] : memref<1x1x128xf32, #tpu.memory_space<vmem>>, vector<1x1x128xf32>
    %102 = vector.shape_cast %101 : vector<1x1x128xf32> to vector<1x128xf32>
    %103 = vector.broadcast %102 : vector<1x128xf32> to vector<8x128xf32>
    %104 = arith.addf %100, %103 : vector<8x128xf32>
    %105 = arith.mulf %104, %104 : vector<8x128xf32>
    %106 = arith.mulf %104, %105 : vector<8x128xf32>
    %cst_47 = arith.constant 4.471500e-02 : f32
    %107 = vector.broadcast %cst_47 : f32 to vector<8x128xf32>
    %108 = arith.mulf %107, %106 : vector<8x128xf32>
    %109 = arith.addf %104, %108 : vector<8x128xf32>
    %cst_48 = arith.constant 0.797884583 : f32
    %110 = vector.broadcast %cst_48 : f32 to vector<8x128xf32>
    %111 = arith.mulf %110, %109 : vector<8x128xf32>
    %112 = math.tanh %111 : vector<8x128xf32>
    %cst_49 = arith.constant 1.000000e+00 : f32
    %113 = vector.broadcast %cst_49 : f32 to vector<8x128xf32>
    %114 = arith.addf %113, %112 : vector<8x128xf32>
    %cst_50 = arith.constant 5.000000e-01 : f32
    %115 = vector.broadcast %cst_50 : f32 to vector<8x128xf32>
    %116 = arith.mulf %115, %114 : vector<8x128xf32>
    %117 = arith.mulf %104, %116 : vector<8x128xf32>
    %118 = arith.truncf %117 : vector<8x128xf32> to vector<8x128xbf16>
    %c0_51 = arith.constant 0 : index
    %c0_52 = arith.constant 0 : index
    %c0_53 = arith.constant 0 : index
    %119 = vector.load %arg12[%c0_51, %c0_52, %c0_53] : memref<1x128x32xbf16, #tpu.memory_space<vmem>>, vector<1x128x32xbf16>
    %120 = vector.shape_cast %119 : vector<1x128x32xbf16> to vector<128x32xbf16>
    %cst_54 = arith.constant dense<0.000000e+00> : vector<8x32xf32>
    %121 = tpu.matmul %118, %120, %cst_54 {dimension_numbers = #tpu.dot_dimension_numbers<[1], [0], [0], [1], [0, 0, 1, 1], [], []>} : vector<8x128xbf16>, vector<128x32xbf16>, vector<8x32xf32> -> vector<8x32xf32>
    %c0_55 = arith.constant 0 : index
    %c0_56 = arith.constant 0 : index
    %c0_57 = arith.constant 0 : index
    %122 = vector.load %arg13[%c0_55, %c0_56, %c0_57] : memref<1x1x32xf32, #tpu.memory_space<vmem>>, vector<1x1x32xf32>
    %123 = vector.shape_cast %122 : vector<1x1x32xf32> to vector<1x32xf32>
    %124 = vector.broadcast %123 : vector<1x32xf32> to vector<8x32xf32>
    %125 = arith.addf %121, %124 : vector<8x32xf32>
    %126 = arith.addf %68, %125 : vector<8x32xf32>
    %c0_58 = arith.constant 0 : index
    %c0_59 = arith.constant 0 : index
    %127 = vector.load %arg15[%c0_58, %c0_59] : memref<8x32xf32, #tpu.memory_space<vmem>>, vector<8x32xf32>
    tpu.vector_store %arg15[%c0_58, %c0_59], %126 {strides = array<i32>} : memref<8x32xf32, #tpu.memory_space<vmem>>, vector<8x32xf32>,
    %c7_i32 = arith.constant 7 : i32
    %128 = arith.cmpi eq, %arg1, %c7_i32 : i32
    %129 = arith.extui %128 : i1 to i32
    %c0_i32_60 = arith.constant 0 : i32
    %130 = arith.cmpi ne, %129, %c0_i32_60 : i32
    scf.if %130 {
      %131 = arith.truncf %126 : vector<8x32xf32> to vector<8x32xbf16>
      %c0_61 = arith.constant 0 : index
      %c0_62 = arith.constant 0 : index
      %132 = vector.load %arg14[%c0_61, %c0_62] : memref<8x32xbf16, #tpu.memory_space<vmem>>, vector<8x32xbf16>
      tpu.vector_store %arg14[%c0_61, %c0_62], %131 {strides = array<i32>} : memref<8x32xbf16, #tpu.memory_space<vmem>>, vector<8x32xbf16>,
    } else {
    }
    return
  }
  func.func @transform_0(%arg0: i32, %arg1: i32) -> (i32, i32) {
    %c0_i32 = arith.constant 0 : i32
    %c0_i32_0 = arith.constant 0 : i32
    return %arg0, %c0_i32 : i32, i32
  }
  func.func @transform_1(%arg0: i32, %arg1: i32) -> (i32, i32) {
    %c0_i32 = arith.constant 0 : i32
    %c0_i32_0 = arith.constant 0 : i32
    %c0_i32_1 = arith.constant 0 : i32
    return %c0_i32, %c0_i32_0 : i32, i32
  }
  func.func @transform_2(%arg0: i32, %arg1: i32) -> (i32, i32, i32) {
    %c0_i32 = arith.constant 0 : i32
    %c0_i32_0 = arith.constant 0 : i32
    %c0_i32_1 = arith.constant 0 : i32
    return %arg1, %c0_i32, %c0_i32_0 : i32, i32, i32
  }
  func.func @transform_3(%arg0: i32, %arg1: i32) -> (i32, i32, i32) {
    %c0_i32 = arith.constant 0 : i32
    %c0_i32_0 = arith.constant 0 : i32
    %c0_i32_1 = arith.constant 0 : i32
    return %arg1, %c0_i32, %c0_i32_0 : i32, i32, i32
  }
  func.func @transform_4(%arg0: i32, %arg1: i32) -> (i32, i32, i32) {
    %c0_i32 = arith.constant 0 : i32
    %c0_i32_0 = arith.constant 0 : i32
    %c0_i32_1 = arith.constant 0 : i32
    return %arg1, %c0_i32, %c0_i32_0 : i32, i32, i32
  }
  func.func @transform_5(%arg0: i32, %arg1: i32) -> (i32, i32, i32) {
    %c0_i32 = arith.constant 0 : i32
    %c0_i32_0 = arith.constant 0 : i32
    %c0_i32_1 = arith.constant 0 : i32
    return %arg1, %c0_i32, %c0_i32_0 : i32, i32, i32
  }
  func.func @transform_6(%arg0: i32, %arg1: i32) -> (i32, i32, i32) {
    %c0_i32 = arith.constant 0 : i32
    %c0_i32_0 = arith.constant 0 : i32
    %c0_i32_1 = arith.constant 0 : i32
    return %arg1, %c0_i32, %c0_i32_0 : i32, i32, i32
  }
  func.func @transform_7(%arg0: i32, %arg1: i32) -> (i32, i32, i32) {
    %c0_i32 = arith.constant 0 : i32
    %c0_i32_0 = arith.constant 0 : i32
    %c0_i32_1 = arith.constant 0 : i32
    return %arg1, %c0_i32, %c0_i32_0 : i32, i32, i32
  }
  func.func @transform_8(%arg0: i32, %arg1: i32) -> (i32, i32, i32) {
    %c0_i32 = arith.constant 0 : i32
    %c0_i32_0 = arith.constant 0 : i32
    %c0_i32_1 = arith.constant 0 : i32
    return %arg1, %c0_i32, %c0_i32_0 : i32, i32, i32
  }
  func.func @transform_9(%arg0: i32, %arg1: i32) -> (i32, i32, i32) {
    %c0_i32 = arith.constant 0 : i32
    %c0_i32_0 = arith.constant 0 : i32
    %c0_i32_1 = arith.constant 0 : i32
    return %arg1, %c0_i32, %c0_i32_0 : i32, i32, i32
  }
  func.func @transform_10(%arg0: i32, %arg1: i32) -> (i32, i32, i32) {
    %c0_i32 = arith.constant 0 : i32
    %c0_i32_0 = arith.constant 0 : i32
    %c0_i32_1 = arith.constant 0 : i32
    return %arg1, %c0_i32, %c0_i32_0 : i32, i32, i32
  }
  func.func @transform_11(%arg0: i32, %arg1: i32) -> (i32, i32, i32) {
    %c0_i32 = arith.constant 0 : i32
    %c0_i32_0 = arith.constant 0 : i32
    %c0_i32_1 = arith.constant 0 : i32
    return %arg1, %c0_i32, %c0_i32_0 : i32, i32, i32
  }
  func.func @transform_12(%arg0: i32, %arg1: i32) -> (i32, i32) {
    %c0_i32 = arith.constant 0 : i32
    %c0_i32_0 = arith.constant 0 : i32
    return %arg0, %c0_i32 : i32, i32
  }
}

module attributes {stable_mosaic.version = 11 : i64} {
  func.func @_linear_kernel(%arg0: i32, %arg1: memref<8x32xbf16, #tpu.memory_space<vmem>>, %arg2: memref<32x32xbf16, #tpu.memory_space<vmem>>, %arg3: memref<1x32xf32, #tpu.memory_space<vmem>>, %arg4: memref<8x32xf32, #tpu.memory_space<vmem>>) attributes {dimension_semantics = [#tpu.dimension_semantics<parallel>], iteration_bounds = array<i64: 2>, scalar_prefetch = 0 : i64, scratch_operands = 0 : i64, tpu.core_type = #tpu.core_type<tc>, window_params = [{transform_indices = @transform_0, window_bounds = array<i64: 8, 32>}, {pipeline_mode = #tpu.pipeline_mode<synchronous>, transform_indices = @transform_1, window_bounds = array<i64: 32, 32>}, {pipeline_mode = #tpu.pipeline_mode<synchronous>, transform_indices = @transform_2, window_bounds = array<i64: 1, 32>}, {transform_indices = @transform_3, window_bounds = array<i64: 8, 32>}]} {
    %c0 = arith.constant 0 : index
    %c0_0 = arith.constant 0 : index
    %0 = vector.load %arg1[%c0, %c0_0] : memref<8x32xbf16, #tpu.memory_space<vmem>>, vector<8x32xbf16>
    %c0_1 = arith.constant 0 : index
    %c0_2 = arith.constant 0 : index
    %1 = vector.load %arg2[%c0_1, %c0_2] : memref<32x32xbf16, #tpu.memory_space<vmem>>, vector<32x32xbf16>
    %cst = arith.constant dense<0.000000e+00> : vector<8x32xf32>
    %2 = tpu.matmul %0, %1, %cst {dimension_numbers = #tpu.dot_dimension_numbers<[1], [0], [0], [1], [0, 0, 1, 1], [], []>} : vector<8x32xbf16>, vector<32x32xbf16>, vector<8x32xf32> -> vector<8x32xf32>
    %c0_3 = arith.constant 0 : index
    %c0_4 = arith.constant 0 : index
    %3 = vector.load %arg3[%c0_3, %c0_4] : memref<1x32xf32, #tpu.memory_space<vmem>>, vector<1x32xf32>
    %4 = vector.broadcast %3 : vector<1x32xf32> to vector<8x32xf32>
    %5 = arith.addf %2, %4 : vector<8x32xf32>
    %c0_5 = arith.constant 0 : index
    %c0_6 = arith.constant 0 : index
    %6 = vector.load %arg4[%c0_5, %c0_6] : memref<8x32xf32, #tpu.memory_space<vmem>>, vector<8x32xf32>
    tpu.vector_store %arg4[%c0_5, %c0_6], %5 {strides = array<i32>} : memref<8x32xf32, #tpu.memory_space<vmem>>, vector<8x32xf32>,
    return
  }
  func.func @transform_0(%arg0: i32) -> (i32, i32) {
    %c0_i32 = arith.constant 0 : i32
    %c0_i32_0 = arith.constant 0 : i32
    return %arg0, %c0_i32 : i32, i32
  }
  func.func @transform_1(%arg0: i32) -> (i32, i32) {
    %c0_i32 = arith.constant 0 : i32
    %c0_i32_0 = arith.constant 0 : i32
    %c0_i32_1 = arith.constant 0 : i32
    return %c0_i32, %c0_i32_0 : i32, i32
  }
  func.func @transform_2(%arg0: i32) -> (i32, i32) {
    %c0_i32 = arith.constant 0 : i32
    %c0_i32_0 = arith.constant 0 : i32
    %c0_i32_1 = arith.constant 0 : i32
    return %c0_i32, %c0_i32_0 : i32, i32
  }
  func.func @transform_3(%arg0: i32) -> (i32, i32) {
    %c0_i32 = arith.constant 0 : i32
    %c0_i32_0 = arith.constant 0 : i32
    return %arg0, %c0_i32 : i32, i32
  }
}

</mosaic_0001>

<bundles_post_ra>
// kernel: model_forward.3
= control target key start
LH: loop header
LB: loop body
LE: loop exit
PB: predicated region body
PF: predicated region fallthrough
CT: control target
= control target key end

     0   :  { %8 = vsyncpa [#allocation3], 0  ;;  %s628_s0 = inlined_call_operand.hbm [shape: f32[16,32], index: 0, kind: input, shape index: {}]   ;;  %s629_s1 = inlined_call_operand.hbm [shape: bf16[32,32], index: 1, kind: input, shape index: {}]   ;;  %s630_s2 = inlined_call_operand.vmem [shape: f32[1,32], index: 2, kind: input, shape index: {}]   ;;  %s631_s3 = inlined_call_operand.vmem [shape: bf16[16,32], index: 3, kind: output, shape index: {}]  }
   0x1   :  { %10 = vsyncpa [#allocation3 + $0x1], 0 }
   0x2   :  { %11 = vsyncpa [#allocation5], 0  ;;  %s522_s12 = smov 0   ;;  %s524_s13 = smov 0  }
   0x3   :  { %s526_s14 = smov 0   ;;  %s528_s15 = smov 0  }
   0x4 LB: > { %s127_s18 = sshll.u32 %s629_s1, 4  ;;  %s544_s19 = sadd.s32 4294967295, %s497_s15   ;;  %s497_s15 = sphi %s528_s15, %s638_s15   ;;  %s493_s14 = sphi %s526_s14, %s637_s14   ;;  %s489_s13 = sphi %s524_s13, %s636_s13   ;;  %s485_s12 = sphi %s522_s12, %s635_s12   ;;  %s128_s18 = int_to_ptr.hbm [resolvable:$true] %s127_s18 }
   0x5   : > { %p324_p0 = scmp.ge.s32.totalorder %s497_s15, 1  ;;  %p38_p1 = scmp.eq.s32.totalorder %s544_s19, 0 }
   0x6   : > { %p116_p2 = scmp.lt.s32.totalorder %s497_s15, 3  ;;  %s499_s21 = smov [#allocation4]  }
   0x7   : > { %s129_s22 = sshll.u32 %s499_s21, 4  ;;  %s500_s23 = smov 64   ;;  %s130_s22 = int_to_ptr.vmem [resolvable:$true] %s129_s22 }
   0x8   : > { %p549_p3 = pnand %p324_p0, %p116_p2  ;;  %s501_s24 = smov 4  }
   0x9   : > { %s558_s25 = sadd.s32 1, %s497_s15   ;;  %s24_s27 = sadd.s32 1, %s493_s14 }
   0xa   : > { %p352_p4 = pneg %p549_p3  ;;  %s21_s26 = ssub.s32 %s497_s15, %s558_s25 }
   0xb   : > { %p22_p6 = scmp.eq.s32.totalorder %s21_s26, 0  ;;  %p31_p7 = scmp.ne.s32.totalorder %s493_s14, %s489_s13 }
   0xc   : > { %p353_p5 = pnand %p352_p4, %p38_p1  ;;  %p32_p8 = scmp.eq.s32.totalorder %s497_s15, 0 }
   0xd   : > { %p37_p9 = scmp.ne.s32.totalorder %s489_s13, %s485_s12  ;;  %p361_p12 = scmp.lt.s32.totalorder %s497_s15, 2 }
   0xe   : > { %355 = dma.hbm_to_vmem [thread:$0]  (!%p353_p5), %s128_s18, 256, %s130_s22, [#allocation5], %s500_s23, %s500_s23, %s501_s24  }
   0xf   : > { %s568_s28 = scalar_select %p22_p6, %s493_s14, %s24_s27  }
  0x10   : > { %p33_p10 = por %p32_p8, %p31_p7  ;;  %p572_p11 = por %p38_p1, %p37_p9 }
  0x11   : > { %s146_s30 = sand.u32 1, %s493_s14   ;;  %s328_s5 = sshll.u32 %s497_s15, 3 }
  0x12   : > { %s327_s4 = sshll.u32 %s146_s30, 3  ;;  %s154_s8 = scalar_lea.hbm %s628_s0, %s328_s5 }
  0x13   : > { %s150_s9 = scalar_lea.vmem [#allocation2], %s327_s4  ;;  %s156_s11 = sshll.u32 %s154_s8, 4  ;;  %s157_s11 = int_to_ptr.hbm [resolvable:$true] %s156_s11 }
  0x14   : > { %s158_s10 = sshll.u32 %s150_s9, 4  ;;  %p582_p13 = pnand %p361_p12, %p33_p10  ;;  %s159_s10 = int_to_ptr.vmem [resolvable:$true] %s158_s10 }
  0x15   : > { %s147_s16 = scalar_lea.sflag [#allocation3], %s146_s30  ;;  %s429_s17 = sshra.s32 %s157_s11, 4  ;;  %s430_s17 = int_to_ptr.hbm [resolvable:$true] %s429_s17 }
  0x16   : > { %s431_s18 = scalar_lea.hbm %s430_s17, 8  ;;  %p433_p2 = pneg %p582_p13 }
  0x17   : > { %p432_p0 = scmp.ne.s32.totalorder %s430_s17, %s431_s18  ;;  %s436_s22 = scalar_lea.hbm %s628_s0, 16 }
  0x18   : > { %p437_p6 = scmp.lt.s32.totalorder %s430_s17, %s628_s0  ;;  %p438_p7 = scmp.lt.s32.totalorder %s436_s22, %s431_s18 }
  0x19   : > { %p434_p4 = pnand %p433_p2, %p432_p0 }
  0x1a   : > { %p439_p8 = por %p438_p7, %p437_p6 }
  0x1b   : > { %p435_p5 = pneg %p434_p4 }
  0x1d   : > { %p440_p9 = pnand %p439_p8, %p435_p5 }
  0x1f   : > { %443 = shalt.err (!%p440_p9)
}
  0x20   : > { %359 = dma.hbm_to_vmem [thread:$0]  (!%p582_p13), %s157_s11, 128, %s159_s10, %s147_s16  }
  0x21   : > { %167 = sbr.rel (%p549_p3) target bundleno = 183 (0xb7), region = 32  ;;  %s169_s26 = sand.u32 (!%p549_p3), 1, %s489_s13  }
  0x22   : > { %s330_s27 = sshll.u32 (!%p549_p3), %s169_s26, 3  ;;  %s170_s30 = scalar_lea.sflag (!%p549_p3), [#allocation3], %s169_s26 }
  0x23   : > { %s173_s4 = scalar_lea.vmem (!%p549_p3), [#allocation2], %s330_s27 }
  0x26   : > { %476 = dma.done.wait (%p572_p11), %s170_s30, 128  }
  0x27   : > { %478 = vsyncadd (%p572_p11), %s170_s30, 4294967168 }
  0x28   : > { %480 = dma.done.wait (%p38_p1), [#allocation5], 256  }
  0x29   : > { %482 = vsyncadd (%p38_p1), [#allocation5], 4294967040  ;;  %v345_v0 = vld [vmem:[#allocation4 + $0x8] sm:$0xff]  ;;  %v344_v1 = vld [vmem:[#allocation4] sm:$0xff]  ;;  %vm228_vm0 = vcmask 261120   ;;  %p201_p3 = scmp.lt.s32.totalorder %s544_s19, 1 }
  0x2a   : > { %238 = vmatpush.bf16.msra.mxu0 %v345_v0  ;;  %v206_v2 = vld [vmem:[%s173_s4] sm:$0xff]  ;;  %vm246_vm1 = vcmask 257024  }
  0x2b   : > { %v207_v3 = vpack.c.bf16 %v206_v2, %v206_v2  ;;  %s640_s19 = smov (!%p201_p3, %s544_s19), 1  ;;  %v398_v4 = vld [vmem:[%s630_s2] ss:$0 sm:$0xff] }
  0x2c   : > { %s332_s5 = sshll.u32 %s640_s19, 2 }
  0x2d   : > { %s204_s8 = scalar_lea.vmem %s631_s3, %s332_s5 }
  0x2e   : > { %239 = vmatpush.bf16.msra.mxu0 %v344_v1 }
  0x31   : > { %341 = vmatmul.msk.bf16.vlgmr.msra.gmra.mxu0 %vm228_vm0, %v207_v3 }
  0xae   : > { %v241_v5 = vpop.f32.mrf.mxu0 }
  0xaf   : > { %v242_v6 = vadd.f32 %v398_v4, %v241_v5 }
  0xb1   : > { %v245_v7 = vpack.c.bf16 %v242_v6, %v242_v6 }
  0xb3   : > { %247 = vst.msk [vmem:[%s204_s8] sm:$0xf] %vm246_vm1, %v245_v7 }
  0xb6   : > { %v243_v8 = vpop.f32.mrf.mxu0 }
  0xb7 PF: > { %p14_p1 = scmp.ge.s32.totalorder %s558_s25, 4   ;;  %s635_s12 = smov %s489_s13 }
  0xb8   : > { %s636_s13 = smov %s493_s14  ;;  %s637_s14 = smov %s568_s28 }
  0xb9   : > { %s638_s15 = smov %s558_s25  ;;  %16 = sbr.rel (!%p14_p1) target bundleno = 4 (0x4), region = 76 }
  0xbe   :  { %267 = vsyncpa [#allocation3], 1 }
  0xbf   :  { %269 = vsyncpa [#allocation3 + $0x1], 1 }
  0xc0   :  { %270 = vsyncpa [#allocation5], 1 }

// kernel: model_forward.5
= control target key start
LH: loop header
LB: loop body
LE: loop exit
PB: predicated region body
PF: predicated region fallthrough
CT: control target
= control target key end

     0   :  { %8 = vsyncpa [#allocation3], 0  ;;  %s520_s0 = inlined_call_operand.vmem [shape: bf16[16,32], index: 0, kind: input, shape index: {}]   ;;  %s521_s1 = inlined_call_operand.vmem [shape: bf16[32,32], index: 1, kind: input, shape index: {}]   ;;  %s522_s2 = inlined_call_operand.vmem [shape: f32[1,32], index: 2, kind: input, shape index: {}]   ;;  %s523_s3 = inlined_call_operand.hbm [shape: f32[16,32], index: 3, kind: output, shape index: {}]  }
   0x1   :  { %10 = vsyncpa [#allocation3 + $0x1], 0  ;;  %s426_s12 = smov 0   ;;  %s428_s13 = smov 0  }
   0x2   :  { %s430_s14 = smov 0   ;;  %s432_s15 = smov 0  }
   0x3 LB: > { %s447_s16 = sadd.s32 4294967295, %s404_s15   ;;  %s281_s17 = sadd.s32 4294967294, %s404_s15   ;;  %s404_s15 = sphi %s432_s15, %s529_s15   ;;  %s400_s14 = sphi %s430_s14, %s528_s14   ;;  %s396_s13 = sphi %s428_s13, %s527_s13   ;;  %s392_s12 = sphi %s426_s12, %s526_s12  }
   0x4   : > { %s451_s18 = sadd.s32 1, %s404_s15   ;;  %s91_s19 = sadd.s32 1, %s400_s14 }
   0x5   : > { %s88_s20 = ssub.s32 %s404_s15, %s451_s18  ;;  %p101_p0 = scmp.ne.s32.totalorder %s400_s14, %s396_s13 }
   0x6   : > { %p89_p1 = scmp.eq.s32.totalorder %s88_s20, 0  ;;  %p102_p2 = scmp.eq.s32.totalorder %s447_s16, 1 }
   0x7   : > { %p107_p3 = scmp.ne.s32.totalorder %s396_s13, %s392_s12  ;;  %p108_p4 = scmp.eq.s32.totalorder %s281_s17, 1 }
   0x8   : > { %s462_s21 = scalar_select %p89_p1, %s400_s14, %s91_s19  }
   0x9   : > { %p464_p5 = por %p102_p2, %p101_p0  ;;  %p468_p6 = por %p108_p4, %p107_p3 }
   0xa   : > { %p284_p7 = scmp.ge.s32.totalorder %s404_s15, 1  ;;  %p139_p8 = scmp.lt.s32.totalorder %s404_s15, 3 }
   0xc   : > { %p140_p9 = pnand %p284_p7, %p139_p8 }
   0xd   : > { %p162_p10 = scmp.lt.s32.totalorder (!%p140_p9), %s447_s16, 1  ;;  %s159_s6 = sand.u32 (!%p140_p9), 1, %s396_s13  }
   0xe   : > { %143 = sbr.rel (%p140_p9) target bundleno = 161 (0xa1), region = 32  ;;  %s297_s7 = sshll.u32 (!%p140_p9), %s447_s16, 3 }
   0xf   : > { %s285_s8 = sshll.u32 (!%p140_p9), %s159_s6, 3  ;;  %s217_s11 = scalar_lea.hbm (!%p140_p9), %s523_s3, %s297_s7 }
  0x10   : > { %s161_s20 = scalar_lea.vmem (!%p140_p9), [#allocation2], %s285_s8  ;;  %s221_s25 = sshll.u32 (!%p140_p9), %s217_s11, 4  ;;  %s222_s25 = int_to_ptr.hbm [resolvable:$true] %s221_s25 }
  0x11   : > { %s219_s24 = sshll.u32 (!%p140_p9), %s161_s20, 4  ;;  %s207_s26 = scalar_lea.sflag (!%p140_p9), [#allocation3], %s159_s6  ;;  %s220_s24 = int_to_ptr.vmem [resolvable:$true] %s219_s24 }
  0x12   : > { %s362_s30 = scalar_lea.hbm (!%p140_p9), %s523_s3, 16 }
  0x13   : > { %v301_v0 = vld [vmem:[%s521_s1 + $0x8] sm:$0xff]  ;;  %v300_v1 = vld [vmem:[%s521_s1] sm:$0xff]  ;;  %s163_s28 = scalar_select %p162_p10, %s447_s16, 1  ;;  %vm188_vm0 = vcmask 261120  }
  0x14   : > { %198 = vmatpush.bf16.msra.mxu0 %v301_v0  ;;  %v341_v3 = vld [vmem:[%s522_s2] ss:$0 sm:$0xff]  ;;  %s356_s16 = sshra.s32 %s222_s25, 4  ;;  %s357_s16 = int_to_ptr.hbm [resolvable:$true] %s356_s16 }
  0x15   : > { %s286_s29 = sshll.u32 %s163_s28, 2  ;;  %s358_s27 = scalar_lea.hbm %s357_s16, 8 }
  0x16   : > { %s165_s5 = scalar_lea.vmem %s520_s0, %s286_s29  ;;  %p359_p11 = scmp.ne.s32.totalorder %s357_s16, %s358_s27 }
  0x17   : > { %v167_v2 = vld [vmem:[%s165_s5] sm:$0xf]  ;;  %p363_p0 = scmp.lt.s32.totalorder %s357_s16, %s523_s3  ;;  %p364_p1 = scmp.lt.s32.totalorder %s362_s30, %s358_s27 }
  0x18   : > { %199 = vmatpush.bf16.msra.mxu0 %v300_v1  ;;  %p360_p12 = pnand %p359_p11, %p464_p5 }
  0x19   : > { %p365_p2 = por %p364_p1, %p363_p0 }
  0x1a   : > { %p361_p13 = pneg %p360_p12 }
  0x1b   : > { %295 = vmatmul.msk.bf16.vlgmr.msra.gmra.mxu0 %vm188_vm0, %v167_v2 }
  0x1c   : > { %p366_p3 = pnand %p365_p2, %p361_p13 }
  0x98   : > { %v201_v4 = vpop.f32.mrf.mxu0 }
  0x99   : > { %v202_v5 = vadd.f32 %v341_v3, %v201_v4 }
  0x9b   : > { %205 = vst.msk [vmem:[%s161_s20] sm:$0xff] %vm188_vm0, %v202_v5 }
  0x9c   : > { %369 = shalt.err (!%p366_p3)
}
  0x9d   : > { %302 = dma.vmem_to_hbm [thread:$0]  (%p464_p5), %s220_s24, 128, %s222_s25, %s207_s26  }
  0xa0   : > { %v203_v6 = vpop.f32.mrf.mxu0 }
  0xa1 PF: > { %p308_p4 = scmp.ge.s32.totalorder %s404_s15, 2  ;;  %s233_s6 = sand.u32 1, %s392_s12  }
  0xa2   : > { %s234_s7 = scalar_lea.sflag [#allocation3], %s233_s6 }
  0xa3   : > { %p305_p7 = pnand %p308_p4, %p468_p6 }
  0xa5   : > { %p306_p8 = pneg %p305_p7 }
  0xa7   : > { %387 = dma.done.wait (%p306_p8), %s234_s7, 128  }
  0xa8   : > { %389 = vsyncadd (%p306_p8), %s234_s7, 4294967168  ;;  %p13_p9 = scmp.ge.s32.totalorder %s451_s18, 4   ;;  %s526_s12 = smov %s396_s13 }
  0xa9   : > { %s527_s13 = smov %s400_s14  ;;  %s528_s14 = smov %s462_s21 }
  0xaa   : > { %s529_s15 = smov %s451_s18  ;;  %15 = sbr.rel (!%p13_p9) target bundleno = 3 (0x3), region = 67 }
  0xaf   :  { %240 = vsyncpa [#allocation3], 1 }
  0xb0   :  { %242 = vsyncpa [#allocation3 + $0x1], 1 }

// kernel: model_forward.4
= control target key start
LH: loop header
LB: loop body
LE: loop exit
PB: predicated region body
PF: predicated region fallthrough
CT: control target
= control target key end

     0   :  { %s1502_s21 = smov 0   ;;  %s1504_s22 = smov 0   ;;  %s1706_s0 = inlined_call_operand.vmem [shape: bf16[16,32], index: 0, kind: input, shape index: {}]   ;;  %s1707_s1 = inlined_call_operand.vmem [shape: f32[8,8], index: 1, kind: input, shape index: {}]   ;;  %s1708_s2 = inlined_call_operand.vmem [shape: f32[8,1,32], index: 2, kind: input, shape index: {}]   ;;  %s1709_s3 = inlined_call_operand.vmem [shape: f32[8,1,32], index: 3, kind: input, shape index: {}]   ;;  %s1710_s4 = inlined_call_operand.vmem [shape: bf16[8,32,384], index: 4, kind: input, shape index: {}]   ;;  %s1711_s5 = inlined_call_operand.vmem [shape: bf16[8,128,32], index: 5, kind: input, shape index: {}]   ;;  %s1712_s6 = inlined_call_operand.vmem [shape: f32[8,1,32], index: 6, kind: input, shape index: {}]   ;;  %s1713_s7 = inlined_call_operand.vmem [shape: f32[8,1,32], index: 7, kind: input, shape index: {}]   ;;  %s1714_s8 = inlined_call_operand.vmem [shape: bf16[8,32,128], index: 8, kind: input, shape index: {}]   ;;  %s1715_s9 = inlined_call_operand.vmem [shape: f32[8,1,128], index: 9, kind: input, shape index: {}]   ;;  %s1716_s10 = inlined_call_operand.vmem [shape: bf16[8,128,32], index: 10, kind: input, shape index: {}]   ;;  %s1717_s11 = inlined_call_operand.vmem [shape: f32[8,1,32], index: 11, kind: input, shape index: {}]   ;;  %s1718_s12 = inlined_call_operand.vmem [shape: bf16[16,32], index: 12, kind: output, shape index: {}]  }
   0x1   :  { %1723 = sst [smem:[#allocation9_spill]] %s1706_s0  ;;  %s1506_s23 = smov 0  }
   0x2   :  { %1724 = sst [smem:[#allocation10_spill]] %s1707_s1  ;;  %s1508_s24 = smov 0  }
   0x3   :  { %1725 = sst [smem:[#allocation11_spill]] %s1710_s4  ;;  %s1510_s25 = smov 0  }
   0x4   :  { %1726 = sst [smem:[#allocation12_spill]] %s1711_s5 }
   0x5 LB: > { %1727 = sst [smem:[#allocation3_spill]] %s1418_s21  ;;  %s31_s26 = sadd.s32 1, %s1426_s23  ;;  %s1434_s25 = sphi %s1510_s25, %s22_s25   ;;  %s1430_s24 = sphi %s1508_s24, %s1747_s24   ;;  %s1426_s23 = sphi %s1506_s23, %s1746_s23   ;;  %s1422_s22 = sphi %s1504_s22, %s1745_s22   ;;  %s1418_s21 = sphi %s1502_s21, %s1744_s21  }
   0x6   : > { %1728 = sst [smem:[#allocation4_spill]] %s1426_s23  ;;  %s34_s27 = sadd.s32 1, %s1430_s24 }
   0x7   : > { %1729 = sst [smem:[#allocation5_spill]] %s1430_s24  ;;  %p32_p0 = scmp.ge.s32.totalorder %s31_s26, 8 }
   0x8   : > { %1730 = sst [smem:[#allocation6_spill]] %s1434_s25  ;;  %p1194_p1 = scmp.ge.s32.totalorder %s1434_s25, 1 }
   0x9   : > { %p461_p2 = scmp.lt.s32.totalorder %s1434_s25, 17  ;;  %s1749_s26 = smov (%p32_p0, %s31_s26), 0 }
   0xa   : > { %1731 = sst [smem:[#allocation7_spill]] %s1749_s26  ;;  %s1751_s27 = smov (!%p32_p0, %s34_s27), %s1430_s24 }
   0xb   : > { %p462_p3 = pnand %p1194_p1, %p461_p2  ;;  %p36_p4 = scmp.ge.s32.totalorder %s1751_s27, 2 }
   0xc   : > { %p539_p5 = scmp.lt.s32.totalorder (!%p462_p3), %s1422_s22, 1  ;;  %p543_p6 = scmp.lt.s32.totalorder (!%p462_p3), %s1418_s21, 7 }
   0xd   : > { %s1753_s27 = smov (%p36_p4, %s1751_s27), 0  ;;  %465 = sbr.rel (%p462_p3) target bundleno = 1453 (0x5ad), region = 68 }
   0xe   : > { %1732 = sst [smem:[#allocation8_spill]] %s1753_s27 }
   0xf   : > { %s1733_s0 = sld [smem:[#allocation9_spill]] (!%p462_p3) }
  0x10   : > { %s1734_s4 = sld [smem:[#allocation11_spill]] (!%p462_p3) }
  0x11   : > { %s1735_s5 = sld [smem:[#allocation12_spill]] (!%p462_p3) }
  0x12   : > { %s1755_s22 = smov (!%p539_p5, %s1422_s22), 1 }
  0x13   : > { %s1536_s28 = scalar_select %p543_p6, %s1418_s21, 7 }
  0x14   : > { %s1195_s29 = sshll.u32 %s1755_s22, 2 }
  0x15   : > { %s542_s14 = scalar_lea.vmem %s1733_s0, %s1195_s29  ;;  %s1336_s27 = smul.u32 48, %s1536_s28 }
  0x16   : > { %s1309_s26 = sshll.u32 %s1536_s28, 6  ;;  %s1310_s19 = sshll.u32 %s1536_s28, 4 }
  0x17   : > { %s1558_s21 = scalar_lea.vmem %s1734_s4, %s1336_s27  ;;  %s1563_s15 = scalar_lea.vmem %s1735_s5, %s1309_s26 }
  0x18   : > { %s1573_s23 = scalar_lea.vmem %s1714_s8, %s1310_s19  ;;  %s572_s1 = scalar_lea.vmem %s1715_s9, %s1536_s28 }
  0x19   : > { %s1582_s30 = scalar_lea.vmem %s1716_s10, %s1309_s26  ;;  %s580_s17 = scalar_lea.vmem %s1717_s11, %s1536_s28 }
  0x1a   : > { %s1591_s5 = scalar_lea.vmem %s1718_s12, %s1195_s29  ;;  %s1736_s0 = sld [smem:[#allocation3_spill]] }
  0x20   : > { %p1204_p7 = scmp.ne.s32.totalorder %s1736_s0, 0 }
  0x22   : > { %589 = sbr.rel (%p1204_p7) target bundleno = 43 (0x2b), region = 72 }
  0x27   : > { %v590_v0 = vld [vmem:[%s542_s14] sm:$0xf]  ;;  %vm592_vm0 = vcmask 261120  }
  0x28   : > { %v591_v1 = vunpack.c.l.bf16 %v590_v0 }
  0x2a   : > { %593 = vst.msk [vmem:[#allocation2] sm:$0xff] %vm592_vm0, %v591_v1 }
  0x2b PF: > { %vm597_vm1 = vcmask 261120   ;;  %v1436_v6 = vmov 32.0   ;;  %v1219_v13 = vld [vmem:[%s1558_s21 + $0x18] sm:$0xf]  ;;  %v1316_v14 = vld [vmem:[%s1558_s21 + $0x20] sm:$0xf0]  ;;  %s1737_s25 = scalar_lea.vmem %s1708_s2, %s1536_s28  ;;  %s1738_s14 = scalar_lea.vmem %s1709_s3, %s1536_s28 }
  0x2c   : > { %1384 = vrcp.f32 %v1436_v6  ;;  %v1315_v15 = vld [vmem:[%s1558_s21 + $0x1c] sm:$0xf]  ;;  %v1220_v16 = vor.u32 %v1316_v14, %v1219_v13  ;;  %v1221_v17 = vld [vmem:[%s1558_s21 + $0x24] sm:$0xf0]  ;;  %v1227_v18 = vld [vmem:[%s1558_s21 + $0x20] sm:$0xf]  ;;  %s1740_s24 = scalar_lea.vmem %s1712_s6, %s1536_s28  ;;  %s1741_s13 = scalar_lea.vmem %s1713_s7, %s1536_s28 }
  0x2d   : > { %v1317_v19 = vld [vmem:[%s1558_s21 + $0x28] sm:$0xf0]  ;;  %v1224_v21 = vor.u32 %v1315_v15, %v1221_v17  ;;  %v1207_v23 = vld [vmem:[%s1558_s21] sm:$0xf]  ;;  %v1312_v25 = vld [vmem:[%s1558_s21 + $0x4] sm:$0xf] }
  0x2e   : > { %v1228_v22 = vor.u32 %v1317_v19, %v1227_v18  ;;  %v1313_v24 = vld [vmem:[%s1558_s21 + $0x8] sm:$0xf0]  ;;  %688 = vmatpush.bf16.msra.mxu0 %v1220_v16  ;;  %v1209_v27 = vld [vmem:[%s1558_s21 + $0xc] sm:$0xf0]  ;;  %v1215_v28 = vld [vmem:[%s1558_s21 + $0x8] sm:$0xf] }
  0x2f   : > { %v1208_v26 = vor.u32 %v1313_v24, %v1207_v23  ;;  %v1314_v29 = vld [vmem:[%s1558_s21 + $0x10] sm:$0xf0]  ;;  %701 = vmatpush.bf16.msra.mxu1 %v1224_v21  ;;  %v1212_v30 = vor.u32 %v1312_v25, %v1209_v27  ;;  %v1378_v46 = vld [vmem:[%s1737_s25] ss:$0 sm:$0xff]  ;;  %vm756_vm6 = vcmask 1043456   ;;  %s1739_s19 = sld [smem:[#allocation10_spill]] }
  0x30   : > { %714 = vmatpush.bf16.msra.mxu2 %v1228_v22  ;;  %v1216_v31 = vor.u32 %v1314_v29, %v1215_v28  ;;  %v1379_v49 = vld [vmem:[%s1738_s14] ss:$0 sm:$0xff]  ;;  %vm740_vm7 = vcmask 64512   ;;  %v1323_v13 = vld [vmem:[%s1563_s15 + $0x28] sm:$0xff]  ;;  %v1321_v15 = vld [vmem:[%s1563_s15 + $0x18] sm:$0xff] }
  0x31   : > { %v1594_v2 = vld [vmem:[#allocation2] sm:$0xff]  ;;  %v1320_v16 = vld [vmem:[%s1563_s15 + $0x10] sm:$0xff]  ;;  %v1319_v18 = vld [vmem:[%s1563_s15 + $0x8] sm:$0xff] }
  0x32   : > { %v598_v3 = vsel %vm597_vm1, %v1594_v2, 0.0  ;;  %v609_v4 = vmul.f32 %v1594_v2, %v1594_v2  ;;  %v1385_v7 = vpop.eup %1384  ;;  %689 = vmatpush.bf16.msra.mxu0 %v1208_v26  ;;  %v1322_v14 = vld [vmem:[%s1563_s15 + $0x20] sm:$0xff] }
  0x33   : > { %599 = vadd.xlane.f32.xlu0 %v598_v3  ;;  %v602_v8 = vmul.f32 32.0, %v1385_v7  ;;  %vm606_vm2 = vweird.f32 %v1385_v7  ;;  %702 = vmatpush.bf16.msra.mxu1 %v1212_v30  ;;  %v1318_v23 = vld [vmem:[%s1563_s15] sm:$0xff] }
  0x34   : > { %v610_v5 = vsel %vm597_vm1, %v609_v4, 0.0  ;;  %715 = vmatpush.bf16.msra.mxu2 %v1216_v31 }
  0x35   : > { %v603_v9 = vsub.f32 1.0, %v602_v8  ;;  %v738_v0 = vld [vmem:[%s1739_s19] sm:$0xff] }
  0x37   : > { %v604_v10 = vmul.f32 %v1385_v7, %v603_v9 }
  0x39   : > { %v605_v11 = vadd.f32 %v1385_v7, %v604_v10 }
  0x3b   : > { %611 = vadd.xlane.f32.xlu0 %v610_v5  ;;  %v1607_v20 = vsel %vm606_vm2, %v1385_v7, %v605_v11  ;;  %v1325_v11 = vld [vmem:[%s1563_s15 + $0x38] sm:$0xff] }
  0x3c   : > { %838 = vmatpush.bf16.msrb.mxu1 %v1325_v11 }
  0xa6   : > { %v600_v12 = vpop.xlane.xlu0 %599 }
  0xa7   : > { %v608_v32 = vmul.f32 %v1607_v20, %v600_v12  ;;  %v1324_v12 = vld [vmem:[%s1563_s15 + $0x30] sm:$0xff] }
  0xa8   : > { %839 = vmatpush.bf16.msrb.mxu1 %v1324_v12 }
  0xa9   : > { %v614_v34 = vmul.f32 %v608_v32, %v608_v32  ;;  %v617_v45 = vsub.f32 %v1594_v2, %v608_v32 }
  0xac   : > { %840 = vmatpush.bf16.msrb.mxu1 %v1323_v13 }
  0xae   : > { %v612_v33 = vpop.xlane.xlu0 %611 }
  0xaf   : > { %v613_v35 = vmul.f32 %v612_v33, %v1607_v20 }
  0xb0   : > { %841 = vmatpush.bf16.msrb.mxu1 %v1322_v14  ;;  %v1383_v14 = vld [vmem:[%s580_s17] ss:$0 sm:$0xff] }
  0xb1   : > { %v615_v36 = vsub.f32 %v613_v35, %v614_v34  ;;  %v1327_v34 = vld [vmem:[%s1573_s23 + $0x8] sm:$0xff]  ;;  %v1326_v35 = vld [vmem:[%s1573_s23] sm:$0xff] }
  0xb2   : > { %917 = vmatpush.bf16.msrb.mxu2 %v1327_v34 }
  0xb3   : > { %v616_v37 = vmax.f32 %v615_v36, 0.0 }
  0xb4   : > { %842 = vmatpush.bf16.msrb.mxu1 %v1321_v15 }
  0xb5   : > { %v618_v38 = vadd.f32 1e-05, %v616_v37 }
  0xb6   : > { %918 = vmatpush.bf16.msrb.mxu2 %v1326_v35 }
  0xb7   : > { %1386 = vrsqrt.f32 %v618_v38  ;;  %vm625_vm4 = vweird.f32 %v618_v38 }
  0xb8   : > { %843 = vmatpush.bf16.msrb.mxu1 %v1320_v16 }
  0xbc   : > { %844 = vmatpush.bf16.msrb.mxu1 %v1319_v18 }
  0xbd   : > { %v1387_v39 = vpop.eup %1386 }
  0xbe   : > { %v620_v40 = vmul.f32 %v1387_v39, %v618_v38  ;;  %vm626_vm3 = vweird.f32 %v1387_v39 }
  0xbf   : > { %vm627_vm5 = vmor %vm625_vm4, %vm626_vm3 }
  0xc0   : > { %v621_v41 = vmul.f32 %v1387_v39, %v620_v40  ;;  %845 = vmatpush.bf16.msrb.mxu1 %v1318_v23  ;;  %v1335_v40 = vld [vmem:[%s1582_s30 + $0x38] sm:$0xff] }
  0xc2   : > { %v622_v42 = vmul.f32 0.5, %v621_v41 }
  0xc4   : > { %v623_v43 = vsub.f32 1.5, %v622_v42 }
  0xc6   : > { %v624_v44 = vmul.f32 %v1387_v39, %v623_v43 }
  0xc8   : > { %v628_v47 = vsel %vm627_vm5, %v1387_v39, %v624_v44 }
  0xc9   : > { %v629_v48 = vmul.f32 %v628_v47, %v617_v45 }
  0xcb   : > { %v633_v50 = vmul.f32 %v1378_v46, %v629_v48 }
  0xcd   : > { %v637_v51 = vadd.f32 %v1379_v49, %v633_v50  ;;  %v1380_v49 = vld [vmem:[%s1740_s24] ss:$0 sm:$0xff] }
  0xcf   : > { %v638_v52 = vpack.c.bf16 %v637_v51, %v637_v51 }
  0xd1   : > { %1229 = vmatmul.msk.bf16.vlgmr.msra.gmra.mxu0 %vm597_vm1, %v638_v52  ;;  %1230 = vmatmul.msk.bf16.vlgmr.msra.gmra.mxu1 %vm597_vm1, %v638_v52 }
  0xd2   : > { %1231 = vmatmul.msk.bf16.vlgmr.msra.gmra.mxu2 %vm597_vm1, %v638_v52  ;;  %v1381_v52 = vld [vmem:[%s1741_s13] ss:$0 sm:$0xff] }
 0x14e   : > { %v691_v53 = vpop.f32.mrf.mxu0  ;;  %v704_v54 = vpop.f32.mrf.mxu1 }
 0x14f   : > { %v722_v55 = vpack.c.bf16 %v704_v54, %v704_v54  ;;  %v721_v57 = vpack.c.bf16 %v691_v53, %v691_v53 }
 0x151   : > { %731 = vmatpush.bf16.xpose.msra.mxu3 %v722_v55 }
 0x155   : > { %v717_v56 = vpop.f32.mrf.mxu2 }
 0x156   : > { %v723_v58 = vpack.c.bf16 %v717_v56, %v717_v56  ;;  %v693_v59 = vpop.f32.mrf.mxu0  ;;  %v706_v60 = vpop.f32.mrf.mxu1  ;;  %v1334_v56 = vld [vmem:[%s1582_s30 + $0x30] sm:$0xff] }
 0x157   : > { %v1331_v59 = vld [vmem:[%s1582_s30 + $0x18] sm:$0xff]  ;;  %v1330_v60 = vld [vmem:[%s1582_s30 + $0x10] sm:$0xff] }
 0x158   : > { %732 = vmatmul.bf16.vlgmr.msra.gmra.mxu3 %v721_v57  ;;  %v758_v61 = vsel %vm756_vm6, %v723_v58, 0  ;;  %v1333_v57 = vld [vmem:[%s1582_s30 + $0x28] sm:$0xff]  ;;  %v1332_v58 = vld [vmem:[%s1582_s30 + $0x20] sm:$0xff] }
 0x159   : > { %767 = vmatpush.bf16.msrb.mxu0 %v758_v61  ;;  %1002 = vmatpush.bf16.msrb.mxu3 %v1335_v40  ;;  %v1329_v61 = vld [vmem:[%s1582_s30 + $0x8] sm:$0xff] }
 0x15d   : > { %v719_v62 = vpop.f32.mrf.mxu2  ;;  %1003 = vmatpush.bf16.msrb.mxu3 %v1334_v56 }
 0x15e   : > { %v1328_v62 = vld [vmem:[%s1582_s30] sm:$0xff] }
 0x161   : > { %1004 = vmatpush.bf16.msrb.mxu3 %v1333_v57 }
 0x165   : > { %1005 = vmatpush.bf16.msrb.mxu3 %v1332_v58 }
 0x169   : > { %1006 = vmatpush.bf16.msrb.mxu3 %v1331_v59 }
 0x16d   : > { %1007 = vmatpush.bf16.msrb.mxu3 %v1330_v60 }
 0x171   : > { %1008 = vmatpush.bf16.msrb.mxu3 %v1329_v61 }
 0x175   : > { %1009 = vmatpush.bf16.msrb.mxu3 %v1328_v62 }
 0x1db   : > { %v733_v63 = vpop.f32.mrf.mxu3 }
 0x1dc   : > { %v737_v1 = vmul.f32 0.17677669, %v733_v63  ;;  %v1382_v63 = vld [vmem:[%s572_s1] ss:$0 sm:$0xff]  ;;  %s1742_s1 = sld [smem:[#allocation3_spill]] }
 0x1de   : > { %v739_v3 = vadd.f32 %v738_v0, %v737_v1 }
 0x1e0   : > { %v741_v4 = vsel %vm740_vm7, %v739_v3, -inf }
 0x1e1   : > { %742 = vmax.xlane.f32.xlu1 %v741_v4 }
 0x1e2   : > { %p1306_p8 = scmp.ne.s32.totalorder %s1742_s1, 7 }
 0x1e3   : > { %v735_v5 = vpop.f32.mrf.mxu3 }
 0x254   : > { %v743_v6 = vpop.xlane.xlu1 %742 }
 0x255   : > { %v744_v7 = vsub.f32 %v739_v3, %v743_v6 }
 0x257   : > { %v745_v8 = vmul.f32 1.442695, %v744_v7 }
 0x259   : > { %1388 = vpow2.f32 %v745_v8 }
 0x25f   : > { %v1389_v9 = vpop.eup %1388 }
 0x260   : > { %v747_v10 = vsel %vm740_vm7, %v1389_v9, 0.0 }
 0x261   : > { %748 = vadd.xlane.f32.xlu1 %v747_v10 }
 0x2d4   : > { %v749_v17 = vpop.xlane.xlu1 %748 }
 0x2d5   : > { %1390 = vrcp.f32 %v749_v17 }
 0x2db   : > { %v1391_v19 = vpop.eup %1390 }
 0x2dc   : > { %v751_v21 = vmul.f32 %v1391_v19, %v1389_v9 }
 0x2de   : > { %v752_v22 = vpack.c.bf16 %v751_v21, %v751_v21 }
 0x2e0   : > { %1232 = vmatmul.msk.bf16.vlgmr.msrb.gmra.mxu0 %vm740_vm7, %v752_v22 }
 0x35d   : > { %v769_v24 = vpop.f32.mrf.mxu0 }
 0x35e   : > { %v773_v25 = vpack.c.bf16 %v769_v24, %v769_v24 }
 0x360   : > { %846 = vmatmul.bf16.vlgmr.msrb.gmra.mxu1 %v773_v25 }
 0x365   : > { %v771_v26 = vpop.f32.mrf.mxu0 }
 0x3dd   : > { %v847_v27 = vpop.f32.mrf.mxu1 }
 0x3de   : > { %v1646_v28 = vadd.f32 %v847_v27, %v1594_v2 }
 0x3e0   : > { %v854_v29 = vsel %vm597_vm1, %v1646_v28, 0.0  ;;  %v858_v30 = vmul.f32 %v1646_v28, %v1646_v28 }
 0x3e1   : > { %855 = vadd.xlane.f32.xlu2 %v854_v29 }
 0x3e2   : > { %v859_v32 = vsel %vm597_vm1, %v858_v30, 0.0 }
 0x3e5   : > { %v849_v31 = vpop.f32.mrf.mxu1 }
 0x3e9   : > { %860 = vadd.xlane.f32.xlu2 %v859_v32 }
 0x454   : > { %v856_v33 = vpop.xlane.xlu2 %855 }
 0x455   : > { %v857_v36 = vmul.f32 %v856_v33, %v1607_v20 }
 0x457   : > { %v863_v37 = vmul.f32 %v857_v36, %v857_v36 }
 0x45c   : > { %v861_v2 = vpop.xlane.xlu2 %860 }
 0x45d   : > { %v862_v38 = vmul.f32 %v861_v2, %v1607_v20  ;;  %v866_v20 = vsub.f32 %v1646_v28, %v857_v36 }
 0x45f   : > { %v864_v39 = vsub.f32 %v862_v38, %v863_v37 }
 0x461   : > { %v865_v41 = vmax.f32 %v864_v39, 0.0 }
 0x463   : > { %v867_v42 = vadd.f32 1e-05, %v865_v41 }
 0x465   : > { %1392 = vrsqrt.f32 %v867_v42  ;;  %vm874_vm9 = vweird.f32 %v867_v42 }
 0x46b   : > { %v1393_v43 = vpop.eup %1392 }
 0x46c   : > { %v869_v44 = vmul.f32 %v1393_v43, %v867_v42  ;;  %vm875_vm8 = vweird.f32 %v1393_v43 }
 0x46d   : > { %vm876_vm10 = vmor %vm874_vm9, %vm875_vm8 }
 0x46e   : > { %v870_v45 = vmul.f32 %v1393_v43, %v869_v44 }
 0x470   : > { %v871_v46 = vmul.f32 0.5, %v870_v45 }
 0x472   : > { %v872_v47 = vsub.f32 1.5, %v871_v46 }
 0x474   : > { %v873_v48 = vmul.f32 %v1393_v43, %v872_v47 }
 0x476   : > { %v877_v50 = vsel %vm876_vm10, %v1393_v43, %v873_v48 }
 0x477   : > { %v878_v51 = vmul.f32 %v877_v50, %v866_v20 }
 0x479   : > { %v882_v53 = vmul.f32 %v1380_v49, %v878_v51 }
 0x47b   : > { %v886_v54 = vadd.f32 %v1381_v52, %v882_v53 }
 0x47d   : > { %v887_v55 = vpack.c.bf16 %v886_v54, %v886_v54 }
 0x47f   : > { %1273 = vmatmul.msk.bf16.vlgmr.msrb.gmra.mxu2 %vm597_vm1, %v887_v55 }
 0x502   : > { %v920_v0 = vpop.f32.mrf.mxu2 }
 0x503   : > { %v921_v1 = vadd.f32 %v1382_v63, %v920_v0 }
 0x505   : > { %v924_v3 = vmul.f32 %v921_v1, %v921_v1 }
 0x507   : > { %v925_v4 = vmul.f32 %v924_v3, %v921_v1 }
 0x509   : > { %v926_v5 = vmul.f32 0.044715, %v925_v4 }
 0x50a   : > { %v922_v6 = vpop.f32.mrf.mxu2 }
 0x50b   : > { %v927_v7 = vadd.f32 %v926_v5, %v921_v1 }
 0x50d   : > { %v928_v8 = vmul.f32 0.7978846, %v927_v7 }
 0x50f   : > { %1394 = vtanh.f32 %v928_v8 }
 0x515   : > { %v1395_v9 = vpop.eup %1394 }
 0x516   : > { %v930_v10 = vadd.f32 1.0, %v1395_v9 }
 0x518   : > { %v931_v11 = vmul.f32 0.5, %v930_v10 }
 0x51a   : > { %v932_v12 = vmul.f32 %v931_v11, %v921_v1 }
 0x51c   : > { %v933_v13 = vpack.c.bf16 %v932_v12, %v932_v12 }
 0x51e   : > { %1010 = vmatmul.bf16.vlgmr.msrb.gmra.mxu3 %v933_v13 }
 0x5a1   : > { %v1011_v15 = vpop.f32.mrf.mxu3 }
 0x5a2   : > { %v1012_v16 = vadd.f32 %v1383_v14, %v1011_v15 }
 0x5a4   : > { %v1015_v17 = vadd.f32 %v1012_v16, %v1646_v28 }
 0x5a5   : > { %1020 = sbr.rel (%p1306_p8) target bundleno = 1453 (0x5ad), region = 76 }
 0x5a6   : > { %1016 = vst.msk [vmem:[#allocation2] sm:$0xff] %vm597_vm1, %v1015_v17 }
 0x5a9   : > { %v1013_v18 = vpop.f32.mrf.mxu3 }
 0x5aa   : > { %v1021_v19 = vpack.c.bf16 %v1015_v17, %v1015_v17  ;;  %vm1022_vm11 = vcmask 257024  }
 0x5ac   : > { %1023 = vst.msk [vmem:[%s1591_s5] sm:$0xf] %vm1022_vm11, %v1021_v19 }
 0x5ad PF: > { %s1743_s21 = sld [smem:[#allocation6_spill]] }
 0x5ae   : > { %s1745_s22 = sld [smem:[#allocation5_spill]] }
 0x5af   : > { %s1746_s23 = sld [smem:[#allocation7_spill]] }
 0x5b0   : > { %s1747_s24 = sld [smem:[#allocation8_spill]] }
 0x5b3   : > { %s22_s25 = sadd.s32 1, %s1743_s21   ;;  %s1744_s21 = sld [smem:[#allocation4_spill]] }
 0x5b4   : > { %p19_p9 = scmp.ge.s32.totalorder %s22_s25, 18  }
 0x5b6   :  { %21 = sbr.rel (!%p19_p9) target bundleno = 5 (0x5), region = 136 }

</bundles_post_ra>
